<compile_context>
chip_gen: v6e
topology: v6e:2x2x1
jax: 0.10.0
libtpu: 0.0.40
codegen_flags: <defaults>
</compile_context>

<pallas_src>
import functools

import jax
import jax.numpy as jnp
from jax.experimental import pallas as pl
from jax.experimental.pallas import tpu as pltpu

_LANE = 128      # lane width: last dim of every tile padded to this
_SUBLANE = 8     # f32 sublane granularity for the batch tile


def _round_up(n, m):
    return ((n + m - 1) // m) * m


def _apply_activation(acc, act):
    """Elementwise activation, kept in f32 (VPU/EUP; v5e has no bf16 path)."""
    if act is None:
        return acc
    if act == "relu":
        return jnp.maximum(acc, 0.0)
    if act == "tanh":
        return jnp.tanh(acc)
    if act == "sigmoid":
        return jax.nn.sigmoid(acc)
    raise ValueError(f"unsupported activation: {act!r}")


def _fused_mlp_kernel(*refs, activations, n_layers):
    # refs = (x_ref, w0_ref, b0_ref, w1_ref, b1_ref, ..., o_ref)
    x_ref = refs[0]
    o_ref = refs[-1]

    out = x_ref[...].astype(jnp.float32)
    for i in range(n_layers):
        w_ref = refs[1 + 2 * i]          # bf16, [Din_pad, Dout_pad]
        b_ref = refs[2 + 2 * i]          # f32,  [1, Dout_pad]
        # bf16 MXU operands, f32 accumulate; epilogue in f32.
        acc = jnp.dot(out.astype(jnp.bfloat16), w_ref[...],
                      preferred_element_type=jnp.float32)
        acc = acc + b_ref[...]           # broadcasts over batch rows
        act = activations[i] if i < n_layers - 1 else None  # no act on output layer
        out = _apply_activation(acc, act)

    o_ref[...] = out.astype(o_ref.dtype)


def fused_mlp_forward(x, padded_params, activations, out_dims, *, batch_tile=None):
    """Whole-MLP forward as a single Pallas call, batch-tiled grid."""
    n_layers = len(padded_params)
    assert n_layers >= 1
    assert len(activations) == n_layers - 1

    B, Din = x.shape
    Din_pad = padded_params[0][0].shape[0]
    Dout_pad = padded_params[-1][0].shape[1]
    assert Din <= Din_pad

    # Batch tile: multiple of 8 sublanes, capped so activations stay in vregs.
    TB = batch_tile if batch_tile is not None else min(_round_up(B, _SUBLANE), 256)
    TB = _round_up(TB, _SUBLANE)
    B_pad = _round_up(max(B, TB), TB)

    # Zero-pad x to the padded batch / lane-aligned feature width.
    x_pad = jnp.zeros((B_pad, Din_pad), dtype=x.dtype).at[:B, :Din].set(x)

    flat_inputs = [x_pad]
    in_specs = [pl.BlockSpec((TB, Din_pad), lambda i: (i, 0))]
    for w, b in padded_params:
        flat_inputs.append(w)
        flat_inputs.append(b)
        # Weights/biases are replicated across batch tiles (constant index_map).
        in_specs.append(pl.BlockSpec(w.shape, lambda i: (0, 0)))
        in_specs.append(pl.BlockSpec(b.shape, lambda i: (0, 0)))

    out_specs = pl.BlockSpec((TB, Dout_pad), lambda i: (i, 0))
    grid = (B_pad // TB,)

    # Explicit VMEM budget: resident tiles + all weights/biases, x2 for
    # double-buffering, clamped to v7x's 64 MiB physical VMEM.
    vmem_bytes = 2 * (TB * Din_pad * 4 + TB * Dout_pad * 4)
    for w, b in padded_params:
        vmem_bytes += 2 * (w.size * w.dtype.itemsize + b.size * b.dtype.itemsize)
    vmem_bytes = int(min(max(vmem_bytes + (4 << 20), 16 << 20), 64 << 20))

    kernel = functools.partial(
        _fused_mlp_kernel,
        activations=tuple(activations),
        n_layers=n_layers,
    )

    out_pad = pl.pallas_call(
        kernel,
        out_shape=jax.ShapeDtypeStruct((B_pad, Dout_pad), x.dtype),
        grid=grid,
        in_specs=in_specs,
        out_specs=out_specs,
        compiler_params=pltpu.CompilerParams(
            dimension_semantics=("parallel",),
            vmem_limit_bytes=vmem_bytes,
        ),
    )(*flat_inputs)

    return out_pad[:B, :out_dims]


class PallasMLP:
    """JAX/Pallas equivalent of the PyTorch Model (MLP with per-layer activations)."""

    def __init__(self, input_dims, output_dims, hidden_dim_array=(),
                 non_linear_func_array=(), key=jax.random.PRNGKey(0)):
        self.activations = list(non_linear_func_array)  # "relu"/"tanh"/"sigmoid"
        self.output_dims = output_dims
        dims = [input_dims] + list(hidden_dim_array) + [output_dims]

        self.params = []         # exact f32 (unpadded) params, for the reference
        self.kernel_params = []  # lane-padded params; weights pre-cast to bf16
        for i in range(len(dims) - 1):
            key, kw, kb = jax.random.split(key, 3)
            fan_in = dims[i]
            bound = 1.0 / (fan_in ** 0.5)
            # PyTorch nn.Linear default init: U(-1/sqrt(fan_in), +1/sqrt(fan_in))
            w = jax.random.uniform(kw, (dims[i], dims[i + 1]),
                                   minval=-bound, maxval=bound, dtype=jnp.float32)
            b = jax.random.uniform(kb, (dims[i + 1],),
                                   minval=-bound, maxval=bound, dtype=jnp.float32)
            self.params.append((w, b))

            din_p = _round_up(dims[i], _LANE)
            dout_p = _round_up(dims[i + 1], _LANE)
            w_pad = (jnp.zeros((din_p, dout_p), jnp.float32)
                     .at[:dims[i], :dims[i + 1]].set(w)
                     .astype(jnp.bfloat16))                       # bf16 MXU operand
            b_pad = jnp.zeros((1, dout_p), jnp.float32).at[0, :dims[i + 1]].set(b)
            self.kernel_params.append((w_pad, b_pad))

    def __call__(self, x):
        return fused_mlp_forward(x, self.kernel_params, self.activations,
                                 self.output_dims)


def reference_forward(mlp, x, match_kernel_precision=True):
    """Pure-JAX reference. With match_kernel_precision it mirrors the kernel's
    bf16-matmul / f32-accumulate math; otherwise full f32."""
    out = x.astype(jnp.float32)
    n_layers = len(mlp.params)
    for i, (w, b) in enumerate(mlp.params):
        if match_kernel_precision:
            acc = jnp.dot(out.astype(jnp.bfloat16), w.astype(jnp.bfloat16),
                          preferred_element_type=jnp.float32)
        else:
            acc = jnp.dot(out, w, preferred_element_type=jnp.float32)
        acc = acc + b
        if i < n_layers - 1:
            out = _apply_activation(acc, mlp.activations[i])
        else:
            out = acc
    return out.astype(x.dtype)


if __name__ == "__main__":
    key = jax.random.PRNGKey(0)
    kx, kp = jax.random.split(key)

    batch = 8
    input_dims = 32
    hidden_dims = [64, 32]
    activations = ["relu", "tanh"]
    output_dims = 16

    x = jax.random.normal(kx, (batch, input_dims), dtype=jnp.float32)

    mlp = PallasMLP(input_dims, output_dims, hidden_dims, activations, key=kp)

    y = jax.block_until_ready(mlp(x))
    y_ref_bf16 = jax.block_until_ready(reference_forward(mlp, x, True))
    y_ref_f32 = jax.block_until_ready(reference_forward(mlp, x, False))

    assert y.shape == (batch, output_dims)
    # Matches the kernel's bf16-matmul/f32-accumulate math tightly...
    assert jnp.allclose(y, y_ref_bf16, atol=1e-4, rtol=1e-4), "mismatch vs bf16 reference"
    # ...and the full-f32 semantics of the original module within bf16 noise.
    assert jnp.allclose(y, y_ref_f32, atol=5e-2, rtol=5e-2), "mismatch vs f32 reference"

    print("KERNEL_OK")
</pallas_src>

<mosaic_0001>
module attributes {stable_mosaic.version = 11 : i64} {
  func.func @_fused_mlp_kernel(%arg0: i32, %arg1: memref<8x128xf32, #tpu.memory_space<vmem>>, %arg2: memref<128x128xbf16, #tpu.memory_space<vmem>>, %arg3: memref<1x128xf32, #tpu.memory_space<vmem>>, %arg4: memref<128x128xbf16, #tpu.memory_space<vmem>>, %arg5: memref<1x128xf32, #tpu.memory_space<vmem>>, %arg6: memref<128x128xbf16, #tpu.memory_space<vmem>>, %arg7: memref<1x128xf32, #tpu.memory_space<vmem>>, %arg8: memref<8x128xf32, #tpu.memory_space<vmem>>) attributes {dimension_semantics = [#tpu.dimension_semantics<parallel>], iteration_bounds = array<i64: 1>, scalar_prefetch = 0 : i64, scratch_operands = 0 : i64, tpu.core_type = #tpu.core_type<tc>, window_params = [{transform_indices = @transform_0, window_bounds = array<i64: 8, 128>}, {pipeline_mode = #tpu.pipeline_mode<synchronous>, transform_indices = @transform_1, window_bounds = array<i64: 128, 128>}, {pipeline_mode = #tpu.pipeline_mode<synchronous>, transform_indices = @transform_2, window_bounds = array<i64: 1, 128>}, {pipeline_mode = #tpu.pipeline_mode<synchronous>, transform_indices = @transform_3, window_bounds = array<i64: 128, 128>}, {pipeline_mode = #tpu.pipeline_mode<synchronous>, transform_indices = @transform_4, window_bounds = array<i64: 1, 128>}, {pipeline_mode = #tpu.pipeline_mode<synchronous>, transform_indices = @transform_5, window_bounds = array<i64: 128, 128>}, {pipeline_mode = #tpu.pipeline_mode<synchronous>, transform_indices = @transform_6, window_bounds = array<i64: 1, 128>}, {transform_indices = @transform_7, window_bounds = array<i64: 8, 128>}]} {
    %c0 = arith.constant 0 : index
    %c0_0 = arith.constant 0 : index
    %0 = vector.load %arg1[%c0, %c0_0] : memref<8x128xf32, #tpu.memory_space<vmem>>, vector<8x128xf32>
    %1 = arith.truncf %0 : vector<8x128xf32> to vector<8x128xbf16>
    %c0_1 = arith.constant 0 : index
    %c0_2 = arith.constant 0 : index
    %2 = vector.load %arg2[%c0_1, %c0_2] : memref<128x128xbf16, #tpu.memory_space<vmem>>, vector<128x128xbf16>
    %cst = arith.constant dense<0.000000e+00> : vector<8x128xf32>
    %3 = tpu.matmul %1, %2, %cst {dimension_numbers = #tpu.dot_dimension_numbers<[1], [0], [0], [1], [0, 0, 1, 1], [], []>} : vector<8x128xbf16>, vector<128x128xbf16>, vector<8x128xf32> -> vector<8x128xf32>
    %c0_3 = arith.constant 0 : index
    %c0_4 = arith.constant 0 : index
    %4 = vector.load %arg3[%c0_3, %c0_4] : memref<1x128xf32, #tpu.memory_space<vmem>>, vector<1x128xf32>
    %5 = vector.broadcast %4 : vector<1x128xf32> to vector<8x128xf32>
    %6 = arith.addf %3, %5 : vector<8x128xf32>
    %cst_5 = arith.constant 0.000000e+00 : f32
    %7 = vector.broadcast %cst_5 : f32 to vector<8x128xf32>
    %8 = arith.maximumf %6, %7 : vector<8x128xf32>
    %9 = arith.truncf %8 : vector<8x128xf32> to vector<8x128xbf16>
    %c0_6 = arith.constant 0 : index
    %c0_7 = arith.constant 0 : index
    %10 = vector.load %arg4[%c0_6, %c0_7] : memref<128x128xbf16, #tpu.memory_space<vmem>>, vector<128x128xbf16>
    %cst_8 = arith.constant dense<0.000000e+00> : vector<8x128xf32>
    %11 = tpu.matmul %9, %10, %cst_8 {dimension_numbers = #tpu.dot_dimension_numbers<[1], [0], [0], [1], [0, 0, 1, 1], [], []>} : vector<8x128xbf16>, vector<128x128xbf16>, vector<8x128xf32> -> vector<8x128xf32>
    %c0_9 = arith.constant 0 : index
    %c0_10 = arith.constant 0 : index
    %12 = vector.load %arg5[%c0_9, %c0_10] : memref<1x128xf32, #tpu.memory_space<vmem>>, vector<1x128xf32>
    %13 = vector.broadcast %12 : vector<1x128xf32> to vector<8x128xf32>
    %14 = arith.addf %11, %13 : vector<8x128xf32>
    %15 = math.tanh %14 : vector<8x128xf32>
    %16 = arith.truncf %15 : vector<8x128xf32> to vector<8x128xbf16>
    %c0_11 = arith.constant 0 : index
    %c0_12 = arith.constant 0 : index
    %17 = vector.load %arg6[%c0_11, %c0_12] : memref<128x128xbf16, #tpu.memory_space<vmem>>, vector<128x128xbf16>
    %cst_13 = arith.constant dense<0.000000e+00> : vector<8x128xf32>
    %18 = tpu.matmul %16, %17, %cst_13 {dimension_numbers = #tpu.dot_dimension_numbers<[1], [0], [0], [1], [0, 0, 1, 1], [], []>} : vector<8x128xbf16>, vector<128x128xbf16>, vector<8x128xf32> -> vector<8x128xf32>
    %c0_14 = arith.constant 0 : index
    %c0_15 = arith.constant 0 : index
    %19 = vector.load %arg7[%c0_14, %c0_15] : memref<1x128xf32, #tpu.memory_space<vmem>>, vector<1x128xf32>
    %20 = vector.broadcast %19 : vector<1x128xf32> to vector<8x128xf32>
    %21 = arith.addf %18, %20 : vector<8x128xf32>
    %c0_16 = arith.constant 0 : index
    %c0_17 = arith.constant 0 : index
    %22 = vector.load %arg8[%c0_16, %c0_17] : memref<8x128xf32, #tpu.memory_space<vmem>>, vector<8x128xf32>
    tpu.vector_store %arg8[%c0_16, %c0_17], %21 {strides = array<i32>} : memref<8x128xf32, #tpu.memory_space<vmem>>, vector<8x128xf32>,
    return
  }
  func.func @transform_0(%arg0: i32) -> (i32, i32) {
    %c0_i32 = arith.constant 0 : i32
    %c0_i32_0 = arith.constant 0 : i32
    return %arg0, %c0_i32 : i32, i32
  }
  func.func @transform_1(%arg0: i32) -> (i32, i32) {
    %c0_i32 = arith.constant 0 : i32
    %c0_i32_0 = arith.constant 0 : i32
    %c0_i32_1 = arith.constant 0 : i32
    return %c0_i32, %c0_i32_0 : i32, i32
  }
  func.func @transform_2(%arg0: i32) -> (i32, i32) {
    %c0_i32 = arith.constant 0 : i32
    %c0_i32_0 = arith.constant 0 : i32
    %c0_i32_1 = arith.constant 0 : i32
    return %c0_i32, %c0_i32_0 : i32, i32
  }
  func.func @transform_3(%arg0: i32) -> (i32, i32) {
    %c0_i32 = arith.constant 0 : i32
    %c0_i32_0 = arith.constant 0 : i32
    %c0_i32_1 = arith.constant 0 : i32
    return %c0_i32, %c0_i32_0 : i32, i32
  }
  func.func @transform_4(%arg0: i32) -> (i32, i32) {
    %c0_i32 = arith.constant 0 : i32
    %c0_i32_0 = arith.constant 0 : i32
    %c0_i32_1 = arith.constant 0 : i32
    return %c0_i32, %c0_i32_0 : i32, i32
  }
  func.func @transform_5(%arg0: i32) -> (i32, i32) {
    %c0_i32 = arith.constant 0 : i32
    %c0_i32_0 = arith.constant 0 : i32
    %c0_i32_1 = arith.constant 0 : i32
    return %c0_i32, %c0_i32_0 : i32, i32
  }
  func.func @transform_6(%arg0: i32) -> (i32, i32) {
    %c0_i32 = arith.constant 0 : i32
    %c0_i32_0 = arith.constant 0 : i32
    %c0_i32_1 = arith.constant 0 : i32
    return %c0_i32, %c0_i32_0 : i32, i32
  }
  func.func @transform_7(%arg0: i32) -> (i32, i32) {
    %c0_i32 = arith.constant 0 : i32
    %c0_i32_0 = arith.constant 0 : i32
    return %arg0, %c0_i32 : i32, i32
  }
}

</mosaic_0001>

<bundles_post_ra>
// kernel: tpu_custom_call.1
= control target key start
LH: loop header
LB: loop body
LE: loop exit
PB: predicated region body
PF: predicated region fallthrough
CT: control target
= control target key end

     0   :  { %12 = vsyncpa [#allocation3], 0  ;;  %s807_s0 = inlined_call_operand.hbm [shape: f32[8,128], index: 0, kind: input, shape index: {}]   ;;  %s808_s1 = inlined_call_operand.hbm [shape: bf16[128,128], index: 1, kind: input, shape index: {}]   ;;  %s809_s2 = inlined_call_operand.vmem [shape: f32[1,128], index: 2, kind: input, shape index: {}]   ;;  %s810_s3 = inlined_call_operand.hbm [shape: bf16[128,128], index: 3, kind: input, shape index: {}]   ;;  %s811_s4 = inlined_call_operand.vmem [shape: f32[1,128], index: 4, kind: input, shape index: {}]   ;;  %s812_s5 = inlined_call_operand.hbm [shape: bf16[128,128], index: 5, kind: input, shape index: {}]   ;;  %s813_s6 = inlined_call_operand.vmem [shape: f32[1,128], index: 6, kind: input, shape index: {}]   ;;  %s814_s7 = inlined_call_operand.hbm [shape: f32[8,128], index: 7, kind: output, shape index: {}]  }
   0x1   :  { %13 = vsyncpa [#allocation6], 0 }
   0x2   :  { %14 = vsyncpa [#allocation9], 0 }
   0x3   :  { %15 = vsyncpa [#allocation4], 0  ;;  %s695_s24 = smov [#allocation5]  }
   0x4   :  { %s31_s25 = sshll.u32 %s695_s24, 4  ;;  %s32_s25 = int_to_ptr.vmem [resolvable:$true] %s31_s25 }
   0x5   :  { %s595_s26 = scalar_lea.vmem %s32_s25, 1024  ;;  %p600_p1 = scmp.lt.s32.totalorder %s32_s25, %s32_s25 }
   0x6   :  { %p596_p0 = scmp.ne.s32.totalorder %s32_s25, %s595_s26  ;;  %p601_p2 = scmp.lt.s32.totalorder %s595_s26, %s595_s26 }
   0x8   :  { %p602_p3 = por %p601_p2, %p600_p1 }
   0xa   :  { %p603_p4 = pnand %p602_p3, %p596_p0 }
   0xc   :  { %606 = shalt.err (!%p603_p4)
}
   0xd   :  { %s696_s27 = smov 64   ;;  %s697_s28 = smov 4  }
   0xe   :  { %37 = dma.hbm_to_vmem [thread:$0]  %s808_s1, 1024, %s32_s25, [#allocation6], %s696_s27, %s696_s27, %s697_s28  }
   0xf   :  { %s698_s8 = smov [#allocation2]   ;;  %s699_s10 = smov [#allocation7]  }
  0x10   :  { %s22_s9 = sshll.u32 %s698_s8, 4  ;;  %s45_s11 = sshll.u32 %s699_s10, 4  ;;  %s23_s9 = int_to_ptr.vmem [resolvable:$true] %s22_s9  ;;  %s46_s11 = int_to_ptr.vmem [resolvable:$true] %s45_s11 }
  0x11   :  { %s615_s12 = scalar_lea.vmem %s23_s9, 128  ;;  %p620_p6 = scmp.lt.s32.totalorder %s23_s9, %s23_s9 }
  0x12   :  { %p616_p5 = scmp.ne.s32.totalorder %s23_s9, %s615_s12  ;;  %p621_p7 = scmp.lt.s32.totalorder %s615_s12, %s615_s12 }
  0x14   :  { %p622_p8 = por %p621_p7, %p620_p6 }
  0x16   :  { %p623_p9 = pnand %p622_p8, %p616_p5 }
  0x18   :  { %626 = shalt.err (!%p623_p9)
}
  0x19   :  { %25 = dma.hbm_to_vmem [thread:$0]  %s807_s0, 128, %s23_s9, [#allocation3]  }
  0x1a   :  { %s635_s15 = scalar_lea.vmem %s46_s11, 1024  ;;  %p640_p11 = scmp.lt.s32.totalorder %s46_s11, %s46_s11 }
  0x1b   :  { %p636_p10 = scmp.ne.s32.totalorder %s46_s11, %s635_s15  ;;  %p641_p12 = scmp.lt.s32.totalorder %s635_s15, %s635_s15 }
  0x1d   :  { %p642_p13 = por %p641_p12, %p640_p11 }
  0x1f   :  { %p643_p0 = pnand %p642_p13, %p636_p10 }
  0x21   :  { %646 = shalt.err (!%p643_p0)
}
  0x22   :  { %51 = dma.hbm_to_vmem [thread:$0]  %s810_s3, 1024, %s46_s11, [#allocation6], %s696_s27, %s696_s27, %s697_s28  }
  0x23   :  { %s700_s17 = smov [#allocation8]  }
  0x24   :  { %s59_s18 = sshll.u32 %s700_s17, 4  ;;  %s60_s18 = int_to_ptr.vmem [resolvable:$true] %s59_s18 }
  0x25   :  { %s655_s19 = scalar_lea.vmem %s60_s18, 1024  ;;  %p660_p2 = scmp.lt.s32.totalorder %s60_s18, %s60_s18 }
  0x26   :  { %p656_p1 = scmp.ne.s32.totalorder %s60_s18, %s655_s19  ;;  %p661_p3 = scmp.lt.s32.totalorder %s655_s19, %s655_s19 }
  0x28   :  { %p662_p4 = por %p661_p3, %p660_p2 }
  0x2a   :  { %p663_p5 = pnand %p662_p4, %p656_p1 }
  0x2c   :  { %666 = shalt.err (!%p663_p5)
}
  0x2d   :  { %65 = dma.hbm_to_vmem [thread:$0]  %s812_s5, 1024, %s60_s18, [#allocation9], %s696_s27, %s696_s27, %s697_s28  }
  0x2e   :  { %687 = dma.done.wait [#allocation3], 128  }
  0x2f   :  { %688 = vsyncadd [#allocation3], 4294967168 }
  0x30   :  { %689 = dma.done.wait [#allocation6], 2048  }
  0x31   :  { %690 = vsyncadd [#allocation6], 4294965248 }
  0x32   :  { %691 = dma.done.wait [#allocation9], 1024  }
  0x33   :  { %692 = vsyncadd [#allocation9], 4294966272  ;;  %v701_v0 = vmov 0.0   ;;  %vm702_vm0 = vmmov 0   ;;  %v561_v1 = vld [vmem:[#allocation5 + $0x38] sm:$0xff]   ;;  %v562_v2 = vld [vmem:[#allocation5 + $0x30] sm:$0xff]  }
  0x34   :  { %492 = vmatprep.subr.bf16.mxu0 %v701_v0  ;;  %508 = vmatprep.mubr.msk.bf16.mxu0 %vm702_vm0, %v701_v0  ;;  %v563_v3 = vld [vmem:[#allocation5 + $0x28] sm:$0xff]   ;;  %v569_v4 = vld [vmem:[#allocation7 + $0x38] sm:$0xff]   ;;  %v564_v5 = vld [vmem:[#allocation5 + $0x20] sm:$0xff]   ;;  %s703_s24 = smov [#allocation10]  }
  0x35   :  { %512 = vmatprep.subr.bf16.mxu1 %v701_v0  ;;  %528 = vmatprep.mubr.msk.bf16.mxu1 %vm702_vm0, %v701_v0  ;;  %v570_v6 = vld [vmem:[#allocation7 + $0x30] sm:$0xff]   ;;  %v565_v7 = vld [vmem:[#allocation5 + $0x18] sm:$0xff]   ;;  %v571_v8 = vld [vmem:[#allocation7 + $0x28] sm:$0xff]   ;;  %s427_s25 = sshll.u32 %s703_s24, 4  ;;  %s428_s25 = int_to_ptr.vmem [resolvable:$true] %s427_s25 }
  0x36   :  { %493 = vmatpush3.bf16.msra.mxu0 %v561_v1  ;;  %513 = vmatpush3.bf16.msra.mxu1 %v569_v4  ;;  %v566_v9 = vld [vmem:[#allocation5 + $0x10] sm:$0xff]   ;;  %v572_v10 = vld [vmem:[#allocation7 + $0x20] sm:$0xff]   ;;  %v567_v11 = vld [vmem:[#allocation5 + $0x8] sm:$0xff]   ;;  %p672_p7 = scmp.lt.s32.totalorder %s428_s25, %s428_s25 }
  0x37   :  { %494 = vmatprep.subr.bf16.mxu0 %v701_v0  ;;  %514 = vmatprep.subr.bf16.mxu1 %v701_v0  ;;  %v573_v12 = vld [vmem:[#allocation7 + $0x18] sm:$0xff]   ;;  %v568_v13 = vld [vmem:[#allocation5] sm:$0xff]   ;;  %v574_v15 = vld [vmem:[#allocation7 + $0x10] sm:$0xff]  }
  0x38   :  { %v81_v14 = vld [vmem:[#allocation2] sm:$0xff]  ;;  %v575_v17 = vld [vmem:[#allocation7 + $0x8] sm:$0xff]   ;;  %v576_v18 = vld [vmem:[#allocation7] sm:$0xff]  }
  0x39   :  { %v82_v16 = vpack.c.bf16 %v81_v14, %v81_v14  ;;  %v577_v19 = vld [vmem:[#allocation8 + $0x38] sm:$0xff]   ;;  %v578_v20 = vld [vmem:[#allocation8 + $0x30] sm:$0xff]   ;;  %v579_v21 = vld [vmem:[#allocation8 + $0x28] sm:$0xff]  }
  0x3a   :  { %495 = vmatpush3.bf16.msra.mxu0 %v562_v2  ;;  %515 = vmatpush3.bf16.msra.mxu1 %v570_v6  ;;  %v438_v22 = vld [vmem:[%s809_s2] ss:$0 sm:$0xff]  ;;  %v580_v30 = vld [vmem:[#allocation8 + $0x20] sm:$0xff]   ;;  %v582_v32 = vld [vmem:[#allocation8 + $0x10] sm:$0xff]  }
  0x3b   :  { %496 = vmatprep.subr.bf16.mxu0 %v701_v0  ;;  %516 = vmatprep.subr.bf16.mxu1 %v701_v0  ;;  %v581_v31 = vld [vmem:[#allocation8 + $0x18] sm:$0xff]   ;;  %v583_v33 = vld [vmem:[#allocation8 + $0x8] sm:$0xff]   ;;  %v584_v34 = vld [vmem:[#allocation8] sm:$0xff]  }
  0x3c   :  { %v447_v35 = vld [vmem:[%s811_s4] ss:$0 sm:$0xff]  ;;  %s667_s4 = scalar_lea.vmem %s428_s25, 128 }
  0x3d   :  { %v456_v43 = vld [vmem:[%s813_s6] ss:$0 sm:$0xff]  ;;  %p668_p6 = scmp.ne.s32.totalorder %s428_s25, %s667_s4  ;;  %p673_p8 = scmp.lt.s32.totalorder %s667_s4, %s667_s4 }
  0x3e   :  { %497 = vmatpush3.bf16.msra.mxu0 %v563_v3  ;;  %517 = vmatpush3.bf16.msra.mxu1 %v571_v8 }
  0x3f   :  { %498 = vmatprep.subr.bf16.mxu0 %v701_v0  ;;  %518 = vmatprep.subr.bf16.mxu1 %v701_v0  ;;  %p674_p9 = por %p673_p8, %p672_p7 }
  0x41   :  { %p675_p10 = pnand %p674_p9, %p668_p6 }
  0x42   :  { %499 = vmatpush3.bf16.msra.mxu0 %v564_v5  ;;  %519 = vmatpush3.bf16.msra.mxu1 %v572_v10 }
  0x43   :  { %500 = vmatprep.subr.bf16.mxu0 %v701_v0  ;;  %520 = vmatprep.subr.bf16.mxu1 %v701_v0 }
  0x46   :  { %501 = vmatpush3.bf16.msra.mxu0 %v565_v7  ;;  %521 = vmatpush3.bf16.msra.mxu1 %v573_v12 }
  0x47   :  { %502 = vmatprep.subr.bf16.mxu0 %v701_v0  ;;  %522 = vmatprep.subr.bf16.mxu1 %v701_v0 }
  0x4a   :  { %503 = vmatpush3.bf16.msra.mxu0 %v566_v9  ;;  %523 = vmatpush3.bf16.msra.mxu1 %v574_v15 }
  0x4b   :  { %504 = vmatprep.subr.bf16.mxu0 %v701_v0  ;;  %524 = vmatprep.subr.bf16.mxu1 %v701_v0 }
  0x4e   :  { %505 = vmatpush3.bf16.msra.mxu0 %v567_v11  ;;  %525 = vmatpush3.bf16.msra.mxu1 %v575_v17 }
  0x4f   :  { %506 = vmatprep.subr.bf16.mxu0 %v701_v0  ;;  %526 = vmatprep.subr.bf16.mxu1 %v701_v0 }
  0x52   :  { %507 = vmatpush3.bf16.msra.mxu0 %v568_v13  ;;  %527 = vmatpush3.bf16.msra.mxu1 %v576_v18 }
  0x53   :  { %532 = vmatprep.subr.bf16.mxu0 %v701_v0 }
  0x55   :  { %509 = vmatmul.mubr.bf16.vlgmr.msra.gmra.mxu0 %v82_v16 }
  0x56   :  { %548 = vmatprep.mubr.msk.bf16.mxu0 %vm702_vm0, %v701_v0  ;;  %533 = vmatpush3.bf16.msra.mxu0 %v577_v19 }
  0x57   :  { %534 = vmatprep.subr.bf16.mxu0 %v701_v0 }
  0x5a   :  { %535 = vmatpush3.bf16.msra.mxu0 %v578_v20 }
  0x5b   :  { %536 = vmatprep.subr.bf16.mxu0 %v701_v0 }
  0x5e   :  { %537 = vmatpush3.bf16.msra.mxu0 %v579_v21 }
  0x5f   :  { %538 = vmatprep.subr.bf16.mxu0 %v701_v0 }
  0x62   :  { %539 = vmatpush3.bf16.msra.mxu0 %v580_v30 }
  0x63   :  { %540 = vmatprep.subr.bf16.mxu0 %v701_v0 }
  0x66   :  { %541 = vmatpush3.bf16.msra.mxu0 %v581_v31 }
  0x67   :  { %542 = vmatprep.subr.bf16.mxu0 %v701_v0 }
  0x6a   :  { %543 = vmatpush3.bf16.msra.mxu0 %v582_v32 }
  0x6b   :  { %544 = vmatprep.subr.bf16.mxu0 %v701_v0 }
  0x6e   :  { %545 = vmatpush3.bf16.msra.mxu0 %v583_v33 }
  0x6f   :  { %546 = vmatprep.subr.bf16.mxu0 %v701_v0 }
  0x72   :  { %547 = vmatpush3.bf16.msra.mxu0 %v584_v34 }
 0x115   :  { %v188_v23 = vpop.f32.mrf.mxu0 }
 0x116   :  { %v189_v24 = vadd.f32 %v438_v22, %v188_v23 }
 0x117   :  { %v510_v25 = vpop.f32.mrf.mxu0 }
 0x118   :  { %v194_v26 = vmax.f32 %v189_v24, 0.0 }
 0x119   :  { %v191_v27 = vpop.f32.mrf.mxu0 }
 0x11a   :  { %v195_v28 = vpack.c.bf16 %v194_v26, %v194_v26 }
 0x11b   :  { %v511_v29 = vpop.f32.mrf.mxu0 }
 0x11c   :  { %529 = vmatmul.mubr.bf16.vlgmr.msra.gmra.mxu1 %v195_v28 }
 0x1dc   :  { %v301_v36 = vpop.f32.mrf.mxu1 }
 0x1dd   :  { %v302_v37 = vadd.f32 %v447_v35, %v301_v36 }
 0x1de   :  { %v530_v38 = vpop.f32.mrf.mxu1 }
 0x1df   :  { %585 = vtanh.f32 %v302_v37 }
 0x1e0   :  { %v304_v39 = vpop.f32.mrf.mxu1 }
 0x1e2   :  { %v531_v40 = vpop.f32.mrf.mxu1 }
 0x1ec   :  { %v586_v41 = vpop.eup %585 }
 0x1ed   :  { %v308_v42 = vpack.c.bf16 %v586_v41, %v586_v41 }
 0x1ef   :  { %549 = vmatmul.mubr.bf16.vlgmr.msra.gmra.mxu0 %v308_v42 }
 0x2af   :  { %v414_v44 = vpop.f32.mrf.mxu0 }
 0x2b0   :  { %v415_v45 = vadd.f32 %v456_v43, %v414_v44 }
 0x2b1   :  { %v550_v46 = vpop.f32.mrf.mxu0 }
 0x2b2   :  { %420 = vst [vmem:[#allocation10] sm:$0xff] %v415_v45 }
 0x2b3   :  { %v417_v47 = vpop.f32.mrf.mxu0 }
 0x2b4   :  { %678 = shalt.err (!%p675_p10)
}
 0x2b5   :  { %430 = dma.vmem_to_hbm [thread:$0]  %s428_s25, 128, %s814_s7, [#allocation4]   ;;  %v551_v48 = vpop.f32.mrf.mxu0 }
 0x2b6   :  { %693 = dma.done.wait [#allocation4], 128  }
 0x2b7   :  { %694 = vsyncadd [#allocation4], 4294967168 }
 0x2b8   :  { %434 = vsyncpa [#allocation3], 1 }
 0x2b9   :  { %435 = vsyncpa [#allocation6], 1 }
 0x2ba   :  { %436 = vsyncpa [#allocation9], 1 }
 0x2bb   :  { %437 = vsyncpa [#allocation4], 1 }

</bundles_post_ra>
